<compile_context>
chip_gen: v5e
topology: v5e:2x2
jax: 0.10.0
libtpu: 0.0.40
codegen_flags: <defaults>
</compile_context>

<pallas_src>
import functools

import jax
import jax.numpy as jnp
from jax.experimental import pallas as pl
from jax.experimental.pallas import tpu as pltpu


def _round_up(n: int, m: int) -> int:
    return ((n + m - 1) // m) * m


def _fused_linear_add_kernel(xo_ref, w_ref, out_ref):
    # xo_ref : (Bp, Kp)   combined [x | 1 | 0 | other | 0], sublane-padded batch
    # w_ref  : (Kp, Np)   packed   [W^T ; bias ; 0 ; I_{F_out} ; 0], lane-dense
    # out_ref: (Bp, Np)   full (8,128)-aligned tile -> unmasked vst
    out_ref[...] = jnp.dot(
        xo_ref[...], w_ref[...], preferred_element_type=jnp.float32
    ).astype(out_ref.dtype)


def pack_params(weight, bias):
    """One-time init-side fold of the PyTorch Linear params.

    weight: (F_out, F_in) PyTorch layout; bias: (F_out,)
    Returns W_aug of shape (Kp, Np) with
      rows [0, F_in)                 = W^T
      row  F_in                      = bias        (paired with the "1" column)
      rows [other_off, other_off+F_out) = I_{F_out} (adds kwargs['v1'])
      everything else                = 0
    Kp, Np are 8-/128-rounded so every kernel tile is fully aligned.
    """
    F_out, F_in = weight.shape
    other_off = _round_up(F_in + 1, 8)
    k_pad = _round_up(other_off + F_out, 8)
    n_pad = _round_up(F_out, 128)
    w_aug = jnp.zeros((k_pad, n_pad), jnp.float32)
    w_aug = w_aug.at[:F_in, :F_out].set(weight.T)
    w_aug = w_aug.at[F_in, :F_out].set(bias)
    w_aug = w_aug.at[other_off:other_off + F_out, :F_out].set(
        jnp.eye(F_out, dtype=jnp.float32))
    return w_aug


@functools.partial(jax.jit, static_argnames=("f_in", "f_out"))
def fused_linear_add(x, other, w_aug, *, f_in, f_out):
    """y = x @ W^T + b + other, one gridless Pallas kernel (single MXU pass)."""
    B = x.shape[0]
    Bp = _round_up(B, 8)
    k_pad, n_pad = w_aug.shape
    other_off = _round_up(f_in + 1, 8)

    # Combine x, the bias "1" column and `other` into ONE aligned input slab
    # (cuts the kernel to 2 input DMAs; padding rows/cols are zero).
    xo = jnp.zeros((Bp, k_pad), x.dtype)
    xo = xo.at[:B, :f_in].set(x)
    xo = xo.at[:B, f_in].set(1.0)
    xo = xo.at[:B, other_off:other_off + f_out].set(other)

    vmem = pl.BlockSpec(memory_space=pltpu.MemorySpace.VMEM)
    out_padded = pl.pallas_call(
        _fused_linear_add_kernel,
        out_shape=jax.ShapeDtypeStruct((Bp, n_pad), x.dtype),
        in_specs=[vmem, vmem],
        out_specs=vmem,
        cost_estimate=pl.CostEstimate(
            flops=2 * Bp * k_pad * n_pad,
            transcendentals=0,
            bytes_accessed=4 * (Bp * k_pad + k_pad * n_pad + Bp * n_pad),
        ),
    )(xo, w_aug)

    # Slice the lane-dense padded result back to the logical shape.
    return out_padded[:B, :f_out]


if __name__ == "__main__":
    key = jax.random.PRNGKey(0)
    k_x, k_w, k_b, k_o = jax.random.split(key, 4)

    B, F_in, F_out = 1, 24, 24

    # Deterministic synthetic parameters (PyTorch Linear-like init scale)
    bound = 1.0 / (F_in ** 0.5)
    weight = jax.random.uniform(k_w, (F_out, F_in), jnp.float32, -bound, bound)
    bias = jax.random.uniform(k_b, (F_out,), jnp.float32, -bound, bound)

    # Inputs: x1 and the kwargs['v1'] tensor being added
    x1 = jax.random.normal(k_x, (B, F_in), jnp.float32)
    other = jax.random.normal(k_o, (B, F_out), jnp.float32)

    # Pure-JAX reference.
    ref = x1 @ weight.T + bias + other

    w_aug = pack_params(weight, bias)              # one-time init-side fold
    out = jax.block_until_ready(
        fused_linear_add(x1, other, w_aug, f_in=F_in, f_out=F_out))

    assert out.shape == (B, F_out)
    assert jnp.allclose(out, ref, atol=1e-5, rtol=1e-5), "mismatch vs reference"
    print("KERNEL_OK")
</pallas_src>

<mosaic_0001>
module attributes {stable_mosaic.version = 11 : i64} {
  func.func @_fused_linear_add_kernel(%arg0: memref<8x56xf32, #tpu.memory_space<vmem>>, %arg1: memref<56x128xf32, #tpu.memory_space<vmem>>, %arg2: memref<8x128xf32, #tpu.memory_space<vmem>>) attributes {dimension_semantics = [], scalar_prefetch = 0 : i64, scratch_operands = 0 : i64, tpu.core_type = #tpu.core_type<tc>} {
    %c0 = arith.constant 0 : index
    %c0_0 = arith.constant 0 : index
    %0 = vector.load %arg0[%c0, %c0_0] : memref<8x56xf32, #tpu.memory_space<vmem>>, vector<8x56xf32>
    %c0_1 = arith.constant 0 : index
    %c0_2 = arith.constant 0 : index
    %1 = vector.load %arg1[%c0_1, %c0_2] : memref<56x128xf32, #tpu.memory_space<vmem>>, vector<56x128xf32>
    %cst = arith.constant dense<0.000000e+00> : vector<8x128xf32>
    %2 = tpu.matmul %0, %1, %cst {dimension_numbers = #tpu.dot_dimension_numbers<[1], [0], [0], [1], [0, 0, 1, 1], [], []>} : vector<8x56xf32>, vector<56x128xf32>, vector<8x128xf32> -> vector<8x128xf32>
    %c0_3 = arith.constant 0 : index
    %c0_4 = arith.constant 0 : index
    %3 = vector.load %arg2[%c0_3, %c0_4] : memref<8x128xf32, #tpu.memory_space<vmem>>, vector<8x128xf32>
    tpu.vector_store %arg2[%c0_3, %c0_4], %2 {strides = array<i32>} : memref<8x128xf32, #tpu.memory_space<vmem>>, vector<8x128xf32>,
    return
  }
}

</mosaic_0001>

<bundles_post_ra>
// kernel: fused_linear_add.1
= control target key start
LH: loop header
LB: loop body
LE: loop exit
PB: predicated region body
PF: predicated region fallthrough
CT: control target
= control target key end

     0   :  { %7 = vsyncpa [#allocation3], 0  ;;  %s95_s12 = smov [#allocation2]   ;;  %s96_s14 = smov 128   ;;  %s122_s0 = inlined_call_operand.vmem [shape: f32[8,56], index: 0, kind: input, shape index: {}]   ;;  %s123_s1 = inlined_call_operand.hbm [shape: f32[56,128], index: 1, kind: input, shape index: {}]   ;;  %s124_s2 = inlined_call_operand.vmem [shape: f32[8,128], index: 2, kind: output, shape index: {}]  }
   0x1   :  { %s14_s11 = sshll.u32 %s123_s1, 4  ;;  %s16_s13 = sshll.u32 %s95_s12, 4  ;;  %s15_s11 = int_to_ptr.hbm [resolvable:$true] %s14_s11  ;;  %s17_s13 = int_to_ptr.vmem [resolvable:$true] %s16_s13 }
   0x2   :  { %s97_s15 = smov 8  }
   0x3   :  { %22 = dma.hbm_to_vmem [thread:$0]  %s15_s11, 896, %s17_s13, [#allocation3], %s96_s14, %s96_s14, %s97_s15  }
   0x4   :  { %93 = dma.done.wait [#allocation3], 896  }
   0x5   :  { %94 = vsyncadd [#allocation3], 4294966400  ;;  %v34_v0 = vld [vmem:[#allocation2 + $0x30] sm:$0xff]  ;;  %v33_v1 = vld [vmem:[#allocation2 + $0x28] sm:$0xff]  ;;  %vm35_vm0 = vcmask 457728  }
   0x6   :  { %48 = vmatpush.msra.mxu0 %v34_v0  ;;  %v32_v2 = vld [vmem:[#allocation2 + $0x20] sm:$0xff]  ;;  %v31_v3 = vld [vmem:[#allocation2 + $0x18] sm:$0xff]  ;;  %v30_v4 = vld [vmem:[#allocation2 + $0x10] sm:$0xff] }
   0x7   :  { %v29_v5 = vld [vmem:[#allocation2 + $0x8] sm:$0xff]  ;;  %v28_v6 = vld [vmem:[#allocation2] sm:$0xff] }
   0x8   :  { %49 = vmatpush.msra.mxu0 %v33_v1  ;;  %v27_v7 = vld [vmem:[%s122_s0] sm:$0xff] }
   0xa   :  { %50 = vmatpush.msra.mxu0 %v32_v2 }
   0xc   :  { %51 = vmatpush.msra.mxu0 %v31_v3 }
   0xe   :  { %52 = vmatpush.msra.mxu0 %v30_v4 }
  0x10   :  { %53 = vmatpush.msra.mxu0 %v29_v5 }
  0x12   :  { %54 = vmatpush.msra.mxu0 %v28_v6 }
  0x13   :  { %65 = vmatmul.msk.f32.vlgmr.msra.gmra.mxu0 %vm35_vm0, %v27_v7 }
  0x90   :  { %v56_v8 = vpop.f32.mrf.mxu0 }
  0x91   :  { %59 = vst [vmem:[%s124_s2] sm:$0xff] %v56_v8 }
  0x92   :  { %64 = vsyncpa [#allocation3], 1 }

</bundles_post_ra>
